<compile_context>
chip_gen: v6e
topology: v6e:2x2x1
jax: 0.10.0
libtpu: 0.0.40
codegen_flags: <defaults>
</compile_context>

<pallas_src>
import functools

import jax
import jax.numpy as jnp
from jax.experimental import pallas as pl
from jax.experimental.pallas import tpu as pltpu

PAD = 128  # lane-dense padded output width per branch


def _adaptive_fused_kernel(bl_ref, h_ref, a_s_ref, a_f_ref, x_ref, xs_ref,
                           wg_ref, bg_ref, out_ref, row_ss_ref, *, nhid):
    """One branch per grid step; A_S / A_F / x_sensor stay resident in VMEM."""
    b = pl.program_id(0)

    # --- branch-invariant Frobenius row sums, hoisted to grid step 0 only.
    @pl.when(b == 0)
    def _():
        d = a_f_ref[...].astype(jnp.float32) - a_s_ref[...].astype(jnp.float32)
        row_ss_ref[...] = jnp.sum(d * d, axis=1, keepdims=True)

    H  = h_ref[0]        # [N, F]    bf16
    Wg = wg_ref[0]       # [F, 128]  bf16 : [W_gcn | wl^T | 0-pad]
    bg = bg_ref[0]       # [1, 128]  f32  : [b_gcn | 0-pad]
    bl = bl_ref[b]       # scalar f32 (SMEM)
    x  = x_ref[0]        # [N, D]    bf16
    xs = xs_ref[...]     # [N, D]    bf16 (pre-scaled by 0.5 for the tanh form)

    # --- fused [GCN weight | Linear(200,1)] matmul on the MXU (bf16 in, f32 acc)
    E = jnp.dot(H, Wg, preferred_element_type=jnp.float32)          # [N, 128]
    a = jax.nn.sigmoid(E[:, nhid:nhid + 1] + bl)                    # [N, 1]
    one_m_a = 1.0 - a

    # --- Frobenius weights (A - A_S = (1-a)*(A_F-A_S), A - A_F = -a*(A_F-A_S))
    row_ss = row_ss_ref[...]                                        # [N, 1] f32
    d_s = jnp.sqrt(jnp.sum(one_m_a * one_m_a * row_ss))
    d_f = jnp.sqrt(jnp.sum(a * a * row_ss))
    w = d_f / (d_s + d_f + 1e-8)

    # --- similarity gate: sigmoid(xs @ x^T) = 0.5*tanh(0.5*xs@x^T) + 0.5.
    # xs carries the 0.5 pre-scale; tanh runs on the EUP.  Only the bf16 cast
    # touches the VPU at N^2 scale — the 0.5*... + 0.5 is folded into the
    # redistributed matmul below (S @ E = 0.5*T@E + 0.5*colsum(E)).
    T = jnp.tanh(
        jax.lax.dot_general(xs, x, (((1,), (1,)), ((), ())),
                            preferred_element_type=jnp.float32))    # [N, N] f32
    T_bf = T.astype(jnp.bfloat16)

    # --- redistributed GCN matmul:  A @ E  with  A = a*A_S + (1-a)*A_F + w*S
    E_bf = E.astype(jnp.bfloat16)
    P_s = jnp.dot(a_s_ref[...], E_bf, preferred_element_type=jnp.float32)  # [N,128]
    P_f = jnp.dot(a_f_ref[...], E_bf, preferred_element_type=jnp.float32)  # [N,128]
    P_t = jnp.dot(T_bf, E_bf, preferred_element_type=jnp.float32)          # [N,128]
    col_e = jnp.sum(E, axis=0, keepdims=True)                              # [1,128]

    half_w = 0.5 * w
    out = a * P_s + one_m_a * P_f + half_w * P_t + half_w * col_e + bg     # [N,128]
    out_ref[...] = jnp.maximum(out, 0.0).astype(out_ref.dtype)


def adaptive_forward(H1, H2, H3, A_S, A_F, x1, x2, x3, x_sensor, params):
    """JAX equivalent of Adaptive.forward (eval mode; dropout is identity)."""
    N, F = H1.shape
    D = x1.shape[1]
    NHID = params["branch1"][2].shape[1]
    assert NHID + 1 <= PAD

    # Per-branch tensors stacked along a leading branch axis (bf16 MXU inputs).
    H_all = jnp.stack([H1, H2, H3], axis=0).astype(jnp.bfloat16)     # [3, N, F]
    x_all = jnp.stack([x1, x2, x3], axis=0).astype(jnp.bfloat16)     # [3, N, D]
    xs_half = (0.5 * x_sensor).astype(jnp.bfloat16)                  # [N, D] (0.5 folded in)
    A_S_bf = A_S.astype(jnp.bfloat16)                                # [N, N]
    A_F_bf = A_F.astype(jnp.bfloat16)                                # [N, N]

    wg_list, bg_list, bl_list = [], [], []
    for i in range(3):
        wl, bl, Wg, bg = params[f"branch{i + 1}"]
        # [W_gcn | wl^T | zero-pad] -> [F, 128]; column NHID carries Linear(200,1).
        wg_ext = jnp.concatenate(
            [Wg, wl.T, jnp.zeros((F, PAD - NHID - 1), jnp.float32)], axis=1)
        bg_pad = jnp.concatenate(
            [bg, jnp.zeros((1, PAD - NHID), jnp.float32)], axis=1)
        wg_list.append(wg_ext)
        bg_list.append(bg_pad)
        bl_list.append(bl.reshape(()))
    Wg_all = jnp.stack(wg_list, axis=0).astype(jnp.bfloat16)         # [3, F, 128]
    bg_all = jnp.stack(bg_list, axis=0)                              # [3, 1, 128]
    bl_all = jnp.stack(bl_list, axis=0)                              # [3]

    kernel = functools.partial(_adaptive_fused_kernel, nhid=NHID)

    out_padded = pl.pallas_call(
        kernel,
        out_shape=jax.ShapeDtypeStruct((N, 3 * PAD), jnp.float32),
        grid_spec=pltpu.PrefetchScalarGridSpec(
            num_scalar_prefetch=0,
            grid=(3,),
            in_specs=[
                # bl: scalar table in SMEM (whole array, read by program_id)
                pl.BlockSpec(memory_space=pltpu.MemorySpace.SMEM),
                # per-branch blocks (selected by branch index b)
                pl.BlockSpec((1, N, F), lambda b: (b, 0, 0)),        # H_all
                # shared blocks: constant index -> resident across grid steps
                pl.BlockSpec((N, N), lambda b: (0, 0)),              # A_S (bf16)
                pl.BlockSpec((N, N), lambda b: (0, 0)),              # A_F (bf16)
                pl.BlockSpec((1, N, D), lambda b: (b, 0, 0)),        # x_all
                pl.BlockSpec((N, D), lambda b: (0, 0)),              # 0.5 * x_sensor
                pl.BlockSpec((1, F, PAD), lambda b: (b, 0, 0)),      # Wg_all
                pl.BlockSpec((1, 1, PAD), lambda b: (b, 0, 0)),      # bg_all
            ],
            out_specs=pl.BlockSpec((N, PAD), lambda b: (0, b)),      # column block b
            scratch_shapes=[pltpu.VMEM((N, 1), jnp.float32)],        # row_ss (persists)
        ),
        compiler_params=pltpu.CompilerParams(
            # "arbitrary" is required: grid step 0 seeds the row_ss scratch
            # that steps 1 and 2 reuse.
            dimension_semantics=("arbitrary",),
            vmem_limit_bytes=64 * 1024 * 1024,
        ),
    )(bl_all, H_all, A_S_bf, A_F_bf, x_all, xs_half, Wg_all, bg_all)

    # Drop the lane padding: [N, 3*128] -> [N, 3*NHID] (== torch.cat(..., dim=1)).
    out = out_padded.reshape(N, 3, PAD)[:, :, :NHID].reshape(N, 3 * NHID)
    return out


def _init_params(key, nfeat=200, nhid=100):
    params = {}
    for i in range(3):
        k = jax.random.fold_in(key, i)
        k1, k2, k3, _ = jax.random.split(k, 4)
        wl = jax.random.normal(k1, (1, nfeat), jnp.float32) * 0.05     # Linear(200,1) weight
        bl = jnp.zeros((1, 1), jnp.float32)                            # Linear(200,1) bias
        Wg = jax.random.normal(k2, (nfeat, nhid), jnp.float32) * 0.05  # GCN weight
        bg = jax.random.normal(k3, (1, nhid), jnp.float32) * 0.01      # GCN bias
        params[f"branch{i + 1}"] = (wl, bl, Wg, bg)
    return params


if __name__ == "__main__":
    N, F, D, NHID = 16, 200, 16, 100
    key = jax.random.PRNGKey(0)
    ks = jax.random.split(key, 10)

    H1 = jax.random.normal(ks[0], (N, F), jnp.float32)
    H2 = jax.random.normal(ks[1], (N, F), jnp.float32)
    H3 = jax.random.normal(ks[2], (N, F), jnp.float32)
    # dense "sparse-to-dense" structural adjacency and functional adjacency
    A_S = jax.nn.softmax(jax.random.normal(ks[3], (N, N), jnp.float32), axis=-1)
    A_F = jax.nn.softmax(jax.random.normal(ks[4], (N, N), jnp.float32), axis=-1)
    x1 = jax.random.normal(ks[5], (N, D), jnp.float32)
    x2 = jax.random.normal(ks[6], (N, D), jnp.float32)
    x3 = jax.random.normal(ks[7], (N, D), jnp.float32)
    x_sensor = jax.random.normal(ks[8], (N, D), jnp.float32)

    params = _init_params(ks[9], nfeat=F, nhid=NHID)

    out = adaptive_forward(H1, H2, H3, A_S, A_F, x1, x2, x3, x_sensor, params)
    out = jax.block_until_ready(out)
    assert out.shape == (N, 3 * NHID), out.shape
    assert jnp.all(jnp.isfinite(out))
    print("KERNEL_OK")
</pallas_src>

<mosaic_0001>
module attributes {stable_mosaic.version = 11 : i64} {
  func.func @_adaptive_fused_kernel(%arg0: i32, %arg1: memref<3xf32, #tpu.memory_space<smem>>, %arg2: memref<1x16x200xbf16, #tpu.memory_space<vmem>>, %arg3: memref<16x16xbf16, #tpu.memory_space<vmem>>, %arg4: memref<16x16xbf16, #tpu.memory_space<vmem>>, %arg5: memref<1x16x16xbf16, #tpu.memory_space<vmem>>, %arg6: memref<16x16xbf16, #tpu.memory_space<vmem>>, %arg7: memref<1x200x128xbf16, #tpu.memory_space<vmem>>, %arg8: memref<1x1x128xf32, #tpu.memory_space<vmem>>, %arg9: memref<16x128xf32, #tpu.memory_space<vmem>>, %arg10: memref<16x1xf32, #tpu.memory_space<vmem>>) attributes {dimension_semantics = [#tpu.dimension_semantics<arbitrary>], iteration_bounds = array<i64: 3>, scalar_prefetch = 0 : i64, scratch_operands = 1 : i64, tpu.core_type = #tpu.core_type<tc>, window_params = [{transform_indices = @transform_0, window_bounds = array<i64: 3>}, {transform_indices = @transform_1, window_bounds = array<i64: 1, 16, 200>}, {pipeline_mode = #tpu.pipeline_mode<synchronous>, transform_indices = @transform_2, window_bounds = array<i64: 16, 16>}, {pipeline_mode = #tpu.pipeline_mode<synchronous>, transform_indices = @transform_3, window_bounds = array<i64: 16, 16>}, {transform_indices = @transform_4, window_bounds = array<i64: 1, 16, 16>}, {pipeline_mode = #tpu.pipeline_mode<synchronous>, transform_indices = @transform_5, window_bounds = array<i64: 16, 16>}, {transform_indices = @transform_6, window_bounds = array<i64: 1, 200, 128>}, {transform_indices = @transform_7, window_bounds = array<i64: 1, 1, 128>}, {transform_indices = @transform_8, window_bounds = array<i64: 16, 128>}]} {
    %c0_i32 = arith.constant 0 : i32
    %0 = arith.cmpi eq, %arg0, %c0_i32 : i32
    %1 = arith.extui %0 : i1 to i32
    %c0_i32_0 = arith.constant 0 : i32
    %2 = arith.cmpi ne, %1, %c0_i32_0 : i32
    scf.if %2 {
      %c0_34 = arith.constant 0 : index
      %c0_35 = arith.constant 0 : index
      %72 = vector.load %arg4[%c0_34, %c0_35] : memref<16x16xbf16, #tpu.memory_space<vmem>>, vector<16x16xbf16>
      %73 = arith.extf %72 : vector<16x16xbf16> to vector<16x16xf32>
      %c0_36 = arith.constant 0 : index
      %c0_37 = arith.constant 0 : index
      %74 = vector.load %arg3[%c0_36, %c0_37] : memref<16x16xbf16, #tpu.memory_space<vmem>>, vector<16x16xbf16>
      %75 = arith.extf %74 : vector<16x16xbf16> to vector<16x16xf32>
      %76 = arith.subf %73, %75 : vector<16x16xf32>
      %77 = arith.mulf %76, %76 : vector<16x16xf32>
      %cst_38 = arith.constant dense<0.000000e+00> : vector<16xf32>
      %78 = vector.multi_reduction <add>, %77, %cst_38 [1] : vector<16x16xf32> to vector<16xf32>
      %79 = vector.shape_cast %78 : vector<16xf32> to vector<16x1xf32>
      %c0_39 = arith.constant 0 : index
      %c0_40 = arith.constant 0 : index
      %80 = vector.load %arg10[%c0_39, %c0_40] : memref<16x1xf32, #tpu.memory_space<vmem>>, vector<16x1xf32>
      tpu.vector_store %arg10[%c0_39, %c0_40], %79 {strides = array<i32>} : memref<16x1xf32, #tpu.memory_space<vmem>>, vector<16x1xf32>,
    } else {
    }
    %c0 = arith.constant 0 : index
    %c0_1 = arith.constant 0 : index
    %c0_2 = arith.constant 0 : index
    %3 = vector.load %arg2[%c0, %c0_1, %c0_2] : memref<1x16x200xbf16, #tpu.memory_space<vmem>>, vector<1x16x200xbf16>
    %4 = vector.shape_cast %3 : vector<1x16x200xbf16> to vector<16x200xbf16>
    %c0_3 = arith.constant 0 : index
    %c0_4 = arith.constant 0 : index
    %c0_5 = arith.constant 0 : index
    %5 = vector.load %arg7[%c0_3, %c0_4, %c0_5] : memref<1x200x128xbf16, #tpu.memory_space<vmem>>, vector<1x200x128xbf16>
    %6 = vector.shape_cast %5 : vector<1x200x128xbf16> to vector<200x128xbf16>
    %c0_6 = arith.constant 0 : index
    %c0_7 = arith.constant 0 : index
    %c0_8 = arith.constant 0 : index
    %7 = vector.load %arg8[%c0_6, %c0_7, %c0_8] : memref<1x1x128xf32, #tpu.memory_space<vmem>>, vector<1x1x128xf32>
    %8 = vector.shape_cast %7 : vector<1x1x128xf32> to vector<1x128xf32>
    %9 = arith.index_cast %arg0 : i32 to index
    %10 = memref.load %arg1[%9] : memref<3xf32, #tpu.memory_space<smem>>
    %c0_9 = arith.constant 0 : index
    %c0_10 = arith.constant 0 : index
    %c0_11 = arith.constant 0 : index
    %11 = vector.load %arg5[%c0_9, %c0_10, %c0_11] : memref<1x16x16xbf16, #tpu.memory_space<vmem>>, vector<1x16x16xbf16>
    %12 = vector.shape_cast %11 : vector<1x16x16xbf16> to vector<16x16xbf16>
    %c0_12 = arith.constant 0 : index
    %c0_13 = arith.constant 0 : index
    %13 = vector.load %arg6[%c0_12, %c0_13] : memref<16x16xbf16, #tpu.memory_space<vmem>>, vector<16x16xbf16>
    %cst = arith.constant dense<0.000000e+00> : vector<16x128xf32>
    %14 = tpu.matmul %4, %6, %cst {dimension_numbers = #tpu.dot_dimension_numbers<[1], [0], [0], [1], [0, 0, 1, 1], [], []>} : vector<16x200xbf16>, vector<200x128xbf16>, vector<16x128xf32> -> vector<16x128xf32>
    %15 = vector.extract_strided_slice %14 {offsets = [0, 100], sizes = [16, 1], strides = [1, 1]} : vector<16x128xf32> to vector<16x1xf32>
    %16 = vector.broadcast %10 : f32 to vector<16x1xf32>
    %17 = arith.addf %15, %16 : vector<16x1xf32>
    %18 = arith.negf %17 : vector<16x1xf32>
    %19 = math.exp %18 : vector<16x1xf32>
    %cst_14 = arith.constant 1.000000e+00 : f32
    %20 = vector.broadcast %cst_14 : f32 to vector<16x1xf32>
    %21 = arith.addf %20, %19 : vector<16x1xf32>
    %22 = arith.divf %20, %21 : vector<16x1xf32>
    %cst_15 = arith.constant 1.000000e+00 : f32
    %23 = vector.broadcast %cst_15 : f32 to vector<16x1xf32>
    %24 = arith.subf %23, %22 : vector<16x1xf32>
    %c0_16 = arith.constant 0 : index
    %c0_17 = arith.constant 0 : index
    %25 = vector.load %arg10[%c0_16, %c0_17] : memref<16x1xf32, #tpu.memory_space<vmem>>, vector<16x1xf32>
    %26 = arith.mulf %24, %24 : vector<16x1xf32>
    %27 = arith.mulf %26, %25 : vector<16x1xf32>
    %28 = vector.shape_cast %27 : vector<16x1xf32> to vector<1x16x1xf32>
    %cst_18 = arith.constant dense<0.000000e+00> : vector<1xf32>
    %29 = vector.multi_reduction <add>, %28, %cst_18 [1, 2] : vector<1x16x1xf32> to vector<1xf32>
    %30 = vector.shape_cast %29 : vector<1xf32> to vector<1x1x1xf32>
    %31 = vector.extract %30[0, 0, 0] : f32 from vector<1x1x1xf32>
    %32 = math.sqrt %31 : f32
    %33 = arith.mulf %22, %22 : vector<16x1xf32>
    %34 = arith.mulf %33, %25 : vector<16x1xf32>
    %35 = vector.shape_cast %34 : vector<16x1xf32> to vector<1x16x1xf32>
    %cst_19 = arith.constant dense<0.000000e+00> : vector<1xf32>
    %36 = vector.multi_reduction <add>, %35, %cst_19 [1, 2] : vector<1x16x1xf32> to vector<1xf32>
    %37 = vector.shape_cast %36 : vector<1xf32> to vector<1x1x1xf32>
    %38 = vector.extract %37[0, 0, 0] : f32 from vector<1x1x1xf32>
    %39 = math.sqrt %38 : f32
    %40 = arith.addf %32, %39 : f32
    %cst_20 = arith.constant 9.99999993E-9 : f32
    %41 = arith.addf %40, %cst_20 : f32
    %42 = arith.divf %39, %41 : f32
    %cst_21 = arith.constant dense<0.000000e+00> : vector<16x16xf32>
    %43 = tpu.matmul %13, %12, %cst_21 {dimension_numbers = #tpu.dot_dimension_numbers<[1], [1], [0], [0], [0, 0, 1, 0], [], []>} : vector<16x16xbf16>, vector<16x16xbf16>, vector<16x16xf32> -> vector<16x16xf32>
    %44 = math.tanh %43 : vector<16x16xf32>
    %45 = arith.truncf %44 : vector<16x16xf32> to vector<16x16xbf16>
    %46 = arith.truncf %14 : vector<16x128xf32> to vector<16x128xbf16>
    %c0_22 = arith.constant 0 : index
    %c0_23 = arith.constant 0 : index
    %47 = vector.load %arg3[%c0_22, %c0_23] : memref<16x16xbf16, #tpu.memory_space<vmem>>, vector<16x16xbf16>
    %cst_24 = arith.constant dense<0.000000e+00> : vector<16x128xf32>
    %48 = tpu.matmul %47, %46, %cst_24 {dimension_numbers = #tpu.dot_dimension_numbers<[1], [0], [0], [1], [0, 0, 1, 1], [], []>} : vector<16x16xbf16>, vector<16x128xbf16>, vector<16x128xf32> -> vector<16x128xf32>
    %c0_25 = arith.constant 0 : index
    %c0_26 = arith.constant 0 : index
    %49 = vector.load %arg4[%c0_25, %c0_26] : memref<16x16xbf16, #tpu.memory_space<vmem>>, vector<16x16xbf16>
    %cst_27 = arith.constant dense<0.000000e+00> : vector<16x128xf32>
    %50 = tpu.matmul %49, %46, %cst_27 {dimension_numbers = #tpu.dot_dimension_numbers<[1], [0], [0], [1], [0, 0, 1, 1], [], []>} : vector<16x16xbf16>, vector<16x128xbf16>, vector<16x128xf32> -> vector<16x128xf32>
    %cst_28 = arith.constant dense<0.000000e+00> : vector<16x128xf32>
    %51 = tpu.matmul %45, %46, %cst_28 {dimension_numbers = #tpu.dot_dimension_numbers<[1], [0], [0], [1], [0, 0, 1, 1], [], []>} : vector<16x16xbf16>, vector<16x128xbf16>, vector<16x128xf32> -> vector<16x128xf32>
    %cst_29 = arith.constant dense<0.000000e+00> : vector<128xf32>
    %52 = vector.multi_reduction <add>, %14, %cst_29 [0] : vector<16x128xf32> to vector<128xf32>
    %53 = vector.shape_cast %52 : vector<128xf32> to vector<1x128xf32>
    %cst_30 = arith.constant 5.000000e-01 : f32
    %54 = arith.mulf %cst_30, %42 : f32
    %55 = vector.broadcast %22 : vector<16x1xf32> to vector<16x128xf32>
    %56 = arith.mulf %55, %48 : vector<16x128xf32>
    %57 = vector.broadcast %24 : vector<16x1xf32> to vector<16x128xf32>
    %58 = arith.mulf %57, %50 : vector<16x128xf32>
    %59 = arith.addf %56, %58 : vector<16x128xf32>
    %60 = vector.broadcast %54 : f32 to vector<16x128xf32>
    %61 = arith.mulf %60, %51 : vector<16x128xf32>
    %62 = arith.addf %59, %61 : vector<16x128xf32>
    %63 = vector.broadcast %54 : f32 to vector<1x128xf32>
    %64 = arith.mulf %63, %53 : vector<1x128xf32>
    %65 = vector.broadcast %64 : vector<1x128xf32> to vector<16x128xf32>
    %66 = arith.addf %62, %65 : vector<16x128xf32>
    %67 = vector.broadcast %8 : vector<1x128xf32> to vector<16x128xf32>
    %68 = arith.addf %66, %67 : vector<16x128xf32>
    %cst_31 = arith.constant 0.000000e+00 : f32
    %69 = vector.broadcast %cst_31 : f32 to vector<16x128xf32>
    %70 = arith.maximumf %68, %69 : vector<16x128xf32>
    %c0_32 = arith.constant 0 : index
    %c0_33 = arith.constant 0 : index
    %71 = vector.load %arg9[%c0_32, %c0_33] : memref<16x128xf32, #tpu.memory_space<vmem>>, vector<16x128xf32>
    tpu.vector_store %arg9[%c0_32, %c0_33], %70 {strides = array<i32>} : memref<16x128xf32, #tpu.memory_space<vmem>>, vector<16x128xf32>,
    return
  }
  func.func @transform_0(%arg0: i32) -> i32 {
    %c0_i32 = arith.constant 0 : i32
    %c0_i32_0 = arith.constant 0 : i32
    return %c0_i32 : i32
  }
  func.func @transform_1(%arg0: i32) -> (i32, i32, i32) {
    %c0_i32 = arith.constant 0 : i32
    %c0_i32_0 = arith.constant 0 : i32
    %c0_i32_1 = arith.constant 0 : i32
    return %arg0, %c0_i32, %c0_i32_0 : i32, i32, i32
  }
  func.func @transform_2(%arg0: i32) -> (i32, i32) {
    %c0_i32 = arith.constant 0 : i32
    %c0_i32_0 = arith.constant 0 : i32
    %c0_i32_1 = arith.constant 0 : i32
    return %c0_i32, %c0_i32_0 : i32, i32
  }
  func.func @transform_3(%arg0: i32) -> (i32, i32) {
    %c0_i32 = arith.constant 0 : i32
    %c0_i32_0 = arith.constant 0 : i32
    %c0_i32_1 = arith.constant 0 : i32
    return %c0_i32, %c0_i32_0 : i32, i32
  }
  func.func @transform_4(%arg0: i32) -> (i32, i32, i32) {
    %c0_i32 = arith.constant 0 : i32
    %c0_i32_0 = arith.constant 0 : i32
    %c0_i32_1 = arith.constant 0 : i32
    return %arg0, %c0_i32, %c0_i32_0 : i32, i32, i32
  }
  func.func @transform_5(%arg0: i32) -> (i32, i32) {
    %c0_i32 = arith.constant 0 : i32
    %c0_i32_0 = arith.constant 0 : i32
    %c0_i32_1 = arith.constant 0 : i32
    return %c0_i32, %c0_i32_0 : i32, i32
  }
  func.func @transform_6(%arg0: i32) -> (i32, i32, i32) {
    %c0_i32 = arith.constant 0 : i32
    %c0_i32_0 = arith.constant 0 : i32
    %c0_i32_1 = arith.constant 0 : i32
    return %arg0, %c0_i32, %c0_i32_0 : i32, i32, i32
  }
  func.func @transform_7(%arg0: i32) -> (i32, i32, i32) {
    %c0_i32 = arith.constant 0 : i32
    %c0_i32_0 = arith.constant 0 : i32
    %c0_i32_1 = arith.constant 0 : i32
    return %arg0, %c0_i32, %c0_i32_0 : i32, i32, i32
  }
  func.func @transform_8(%arg0: i32) -> (i32, i32) {
    %c0_i32 = arith.constant 0 : i32
    %c0_i32_0 = arith.constant 0 : i32
    return %c0_i32, %arg0 : i32, i32
  }
}

</mosaic_0001>

<bundles_post_ra>
// kernel: tpu_custom_call.1
= control target key start
LH: loop header
LB: loop body
LE: loop exit
PB: predicated region body
PF: predicated region fallthrough
CT: control target
= control target key end

     0   :  { %s2085_s0 = inlined_call_operand.hbm [shape: f32[3], index: 0, kind: input, shape index: {}]   ;;  %s2086_s1 = inlined_call_operand.hbm [shape: bf16[3,16,200], index: 1, kind: input, shape index: {}]   ;;  %s2087_s2 = inlined_call_operand.hbm [shape: bf16[16,16], index: 2, kind: input, shape index: {}]   ;;  %s2088_s3 = inlined_call_operand.hbm [shape: bf16[16,16], index: 3, kind: input, shape index: {}]   ;;  %s2089_s4 = inlined_call_operand.hbm [shape: bf16[3,16,16], index: 4, kind: input, shape index: {}]   ;;  %s2090_s5 = inlined_call_operand.vmem [shape: bf16[16,16], index: 5, kind: input, shape index: {}]   ;;  %s2091_s6 = inlined_call_operand.hbm [shape: bf16[3,200,128], index: 6, kind: input, shape index: {}]   ;;  %s2092_s7 = inlined_call_operand.vmem [shape: f32[3,1,128], index: 7, kind: input, shape index: {}]   ;;  %s2093_s8 = inlined_call_operand.hbm [shape: f32[16,384], index: 8, kind: output, shape index: {}]  }
   0x1   :  { %2109 = sst [smem:[#allocation25_spill]] %s2085_s0 }
   0x2   :  { %2110 = sst [smem:[#allocation26_spill]] %s2086_s1 }
   0x3   :  { %2111 = sst [smem:[#allocation27_spill]] %s2087_s2 }
   0x4   :  { %13 = vsyncpa [#allocation6], 0 }
   0x5   :  { %14 = vsyncpa [#allocation4], 0 }
   0x6   :  { %16 = vsyncpa [#allocation4 + $0x1], 0 }
   0x7   :  { %17 = vsyncpa [#allocation9], 0 }
   0x8   :  { %18 = vsyncpa [#allocation12], 0 }
   0x9   :  { %20 = vsyncpa [#allocation12 + $0x1], 0 }
   0xa   :  { %21 = vsyncpa [#allocation5], 0 }
   0xb   :  { %23 = vsyncpa [#allocation5 + $0x1], 0  ;;  %s1717_s27 = smov 0   ;;  %s1719_s28 = smov 0  }
   0xc   :  { %s1721_s29 = smov 0   ;;  %s1723_s30 = smov 0  }
   0xd LB: > { %2112 = sst [smem:[#allocation20_spill]] %s1638_s27  ;;  %s1738_s9 = sadd.s32 4294967295, %s1650_s30   ;;  %s1650_s30 = sphi %s1723_s30, %s2143_s30   ;;  %s1646_s29 = sphi %s1721_s29, %s2145_s29   ;;  %s1642_s28 = sphi %s1719_s28, %s2147_s28   ;;  %s1638_s27 = sphi %s1717_s27, %s2146_s27  }
   0xe   : > { %2113 = sst [smem:[#allocation21_spill]] %s1646_s29  ;;  %s1180_s10 = sadd.s32 4294967294, %s1650_s30  }
   0xf   : > { %s1742_s11 = sadd.s32 1, %s1650_s30   ;;  %s57_s12 = sadd.s32 1, %s1646_s29 }
  0x10   : > { %2114 = sst [smem:[#allocation22_spill]] %s1742_s11  ;;  %s54_s13 = ssub.s32 %s1650_s30, %s1742_s11 }
  0x11   : > { %p64_p0 = scmp.ne.s32.totalorder %s1646_s29, %s1642_s28  ;;  %p55_p1 = scmp.eq.s32.totalorder %s54_s13, 0 }
  0x12   : > { %p65_p2 = scmp.eq.s32.totalorder %s1650_s30, 0  ;;  %p70_p3 = scmp.ne.s32.totalorder %s1642_s28, %s1638_s27 }
  0x13   : > { %p2094_p4 = scmp.eq.s32.totalorder %s1738_s9, 0  ;;  %p235_p7 = scmp.eq.s32.totalorder %s1738_s9, 2 }
  0x14   : > { %s1754_s14 = scalar_select %p55_p1, %s1646_s29, %s57_s12  }
  0x15   : > { %p1756_p5 = por %p65_p2, %p64_p0  ;;  %p1762_p6 = por %p2094_p4, %p70_p3 }
  0x16   : > { %2115 = sst [smem:[#allocation23_spill]] %s1754_s14  ;;  %p241_p8 = scmp.eq.s32.totalorder %s1180_s10, 2 }
  0x17   : > { %s2117_s16 = scalar_select %p1762_p6, 1, 0 }
  0x18   : > { %p1181_p9 = scmp.ge.s32.totalorder %s1650_s30, 1  ;;  %p248_p10 = scmp.lt.s32.totalorder %s1650_s30, 4 }
  0x19   : > { %p1769_p11 = por %p235_p7, %p64_p0  ;;  %p1773_p12 = por %p241_p8, %p70_p3 }
  0x1a   : > { %p1777_p13 = pnand %p1181_p9, %p248_p10  ;;  %s1652_s20 = smov [#allocation8]  }
  0x1b   : > { %s2118_s17 = scalar_select %p1769_p11, 1, 0 }
  0x1c   : > { %s2119_s18 = scalar_select %p1773_p12, 1, 0 }
  0x1d   : > { %s2121_s19 = scalar_select %p1777_p13, 1, 0 }
  0x1e   : > { %2120 = sst [smem:[#allocation24_spill]] %s2119_s18  ;;  %p1307_p2 = pneg %p1777_p13 }
  0x1f   : > { %s269_s21 = sshll.u32 %s1652_s20, 4  ;;  %p1334_p3 = scmp.lt.s32.totalorder %s1650_s30, 3  ;;  %s270_s21 = int_to_ptr.vmem [resolvable:$true] %s269_s21 }
  0x20   : > { %p1786_p0 = pnand %p1307_p2, %p2094_p4  ;;  %s1792_s23 = sand.u32 1, %s1646_s29  }
  0x21   : > { %s320_s24 = sand.u32 1, %s1650_s30   ;;  %s1438_s25 = scalar_lea.vmem %s270_s21, 128 }
  0x22   : > { %s2122_s22 = scalar_select %p1786_p0, 1, 0 }
  0x23   : > { %p2100_p7 = pneg %p1786_p0  ;;  %p1439_p8 = scmp.ne.s32.totalorder %s270_s21, %s1438_s25 }
  0x24   : > { %p1446_p1 = scmp.lt.s32.totalorder %s270_s21, %s270_s21  ;;  %p1447_p12 = scmp.lt.s32.totalorder %s1438_s25, %s1438_s25 }
  0x25   : > { %p1441_p9 = pnand %p1439_p8, %p2100_p7 }
  0x26   : > { %p1448_p2 = por %p1447_p12, %p1446_p1 }
  0x27   : > { %p1442_p10 = pneg %p1441_p9 }
  0x29   : > { %p1449_p4 = pnand %p1448_p2, %p1442_p10 }
  0x2b   : > { %1452 = shalt.err (!%p1449_p4)
}
  0x2c   : > { %s2101_s26 = smov 64   ;;  %s2108_s10 = smov 4  }
  0x2d   : > { %s2123_s2 = sld [smem:[#allocation27_spill]]  ;;  %p1812_p12 = pnand %p1334_p3, %p1756_p5 }
  0x2e   : > { %s1189_s25 = sshll.u32 %s1792_s23, 3  ;;  %s1233_s14 = sshll.u32 %s1650_s30, 7 }
  0x2f   : > { %s1821_s18 = scalar_lea.hbm %s2089_s4, %s1233_s14  ;;  %s324_s27 = scalar_lea.vmem [#allocation11], %s1189_s25 }
  0x30   : > { %s331_s12 = sshll.u32 %s324_s27, 4  ;;  %s1825_s15 = scalar_lea.sflag [#allocation12], %s320_s24  ;;  %s1823_s12 = int_to_ptr.vmem [resolvable:$true] %s331_s12 }
  0x31   : > { %p1831_p5 = pneg %p1812_p12  ;;  %s1458_s14 = scalar_lea.hbm %s2089_s4, 384 }
  0x32   : > { %p1459_p8 = scmp.lt.s32.totalorder %s1821_s18, %s2089_s4 }
  0x33   : > { %1313 = dma.hbm_to_vmem [thread:$0]  (!%p1786_p0), %s2123_s2, 128, %s270_s21, [#allocation9], %s2101_s26, %s2101_s26, %s2108_s10  }
  0x34   : > { %s1453_s21 = scalar_lea.hbm %s1821_s18, 128 }
  0x35   : > { %p1454_p4 = scmp.ne.s32.totalorder %s1821_s18, %s1453_s21  ;;  %p1460_p9 = scmp.lt.s32.totalorder %s1458_s14, %s1453_s21 }
  0x37   : > { %p1456_p1 = pnand %p1831_p5, %p1454_p4  ;;  %p1461_p10 = por %p1460_p9, %p1459_p8 }
  0x39   : > { %p1457_p3 = pneg %p1456_p1 }
  0x3b   : > { %p1462_p2 = pnand %p1461_p10, %p1457_p3 }
  0x3d   : > { %1465 = shalt.err (!%p1462_p2)
}
  0x3e   : > { %s1466_s24 = scalar_lea.vmem %s1823_s12, 128  ;;  %s1655_s26 = smov [#allocation11]  }
  0x3f   : > { %p1467_p7 = scmp.ne.s32.totalorder %s1823_s12, %s1466_s24  ;;  %s1471_s29 = sshll.u32 %s1655_s26, 4  ;;  %s1472_s29 = int_to_ptr.vmem [resolvable:$false] %s1471_s29 }
  0x40   : > { %s1473_s11 = scalar_lea.vmem %s1472_s29, 256  ;;  %p1474_p11 = scmp.lt.s32.totalorder %s1823_s12, %s1472_s29 }
  0x41   : > { %p1469_p4 = pnand %p1467_p7, %p1831_p5  ;;  %p1475_p6 = scmp.lt.s32.totalorder %s1473_s11, %s1466_s24 }
  0x43   : > { %p1470_p1 = pneg %p1469_p4  ;;  %p1476_p13 = por %p1475_p6, %p1474_p11 }
  0x45   : > { %p1477_p0 = pnand %p1476_p13, %p1470_p1 }
  0x47   : > { %1480 = shalt.err (!%p1477_p0)
}
  0x48   : > { %s2126_s21 = smov 64   ;;  %s1656_s26 = smov [#allocation3]  }
  0x49   : > { %1323 = dma.hbm_to_vmem [thread:$0]  (!%p1812_p12), %s1821_s18, 128, %s1823_s12, %s1825_s15, %s2126_s21, %s2126_s21, %s2108_s10  }
  0x4a   : > { %p2127_p7 = scmp.ne.s32.totalorder %s2122_s22, 0  ;;  %s2128_s0 = sld [smem:[#allocation25_spill]] }
  0x4b   : > { %s1657_s25 = smov [#allocation10]   ;;  %s1186_s29 = sshll.u32 %s1792_s23, 4 }
  0x4c   : > { %s282_s24 = sshll.u32 %s1657_s25, 4  ;;  %p2129_p11 = pneg %p2127_p7  ;;  %s283_s24 = int_to_ptr.vmem [resolvable:$true] %s282_s24 }
  0x4d   : > { %s1503_s11 = scalar_lea.vmem %s283_s24, 128  ;;  %p1511_p3 = scmp.lt.s32.totalorder %s283_s24, %s283_s24 }
  0x4e   : > { %p1504_p6 = scmp.ne.s32.totalorder %s283_s24, %s1503_s11  ;;  %p1512_p8 = scmp.lt.s32.totalorder %s1503_s11, %s1503_s11 }
  0x50   : > { %1310 = dma.hbm_to_smem (!%p2127_p7), %s2128_s0, 16, %s1656_s26, [#allocation6]  }
  0x51   : > { %p1506_p13 = pnand %p1504_p6, %p2129_p11  ;;  %p1513_p9 = por %p1512_p8, %p1511_p3 }
  0x53   : > { %p1507_p0 = pneg %p1506_p13 }
  0x55   : > { %p1514_p10 = pnand %p1513_p9, %p1507_p0 }
  0x57   : > { %1517 = shalt.err (!%p1514_p10)
}
  0x58   : > { %1316 = dma.hbm_to_vmem [thread:$0]  (!%p2127_p7), %s2088_s3, 128, %s283_s24, [#allocation9], %s2126_s21, %s2126_s21, %s2108_s10  }
  0x59   : > { %s1232_s26 = sshll.u32 %s1650_s30, 8  ;;  %s303_s14 = scalar_lea.vmem [#allocation7], %s1186_s29 }
  0x5a   : > { %s310_s27 = sshll.u32 %s303_s14, 4  ;;  %s2130_s1 = sld [smem:[#allocation26_spill]]  ;;  %s1880_s27 = int_to_ptr.vmem [resolvable:$true] %s310_s27 }
  0x5b   : > { %s300_s22 = scalar_lea.sflag [#allocation4], %s1792_s23 }
  0x60   : > { %s1878_s0 = scalar_lea.hbm %s2130_s1, %s1232_s26  ;;  %s1523_s29 = scalar_lea.hbm %s2130_s1, 768 }
  0x61   : > { %s1518_s2 = scalar_lea.hbm %s1878_s0, 256  ;;  %p1524_p7 = scmp.lt.s32.totalorder %s1878_s0, %s2130_s1 }
  0x62   : > { %p1519_p2 = scmp.ne.s32.totalorder %s1878_s0, %s1518_s2  ;;  %p1525_p6 = scmp.lt.s32.totalorder %s1523_s29, %s1518_s2 }
  0x64   : > { %p1521_p4 = pnand %p1519_p2, %p1831_p5  ;;  %p1526_p11 = por %p1525_p6, %p1524_p7 }
  0x66   : > { %p1522_p1 = pneg %p1521_p4 }
  0x68   : > { %p1527_p13 = pnand %p1526_p11, %p1522_p1 }
  0x6a   : > { %1530 = shalt.err (!%p1527_p13)
}
  0x6b   : > { %s1531_s26 = scalar_lea.vmem %s1880_s27, 256  ;;  %s1658_s25 = smov [#allocation7]  }
  0x6c   : > { %p1532_p0 = scmp.ne.s32.totalorder %s1880_s27, %s1531_s26  ;;  %s1536_s11 = sshll.u32 %s1658_s25, 4  ;;  %s1537_s11 = int_to_ptr.vmem [resolvable:$false] %s1536_s11 }
  0x6d   : > { %s1538_s24 = scalar_lea.vmem %s1537_s11, 512  ;;  %p1539_p9 = scmp.lt.s32.totalorder %s1880_s27, %s1537_s11 }
  0x6e   : > { %p1534_p3 = pnand %p1532_p0, %p1831_p5  ;;  %p1540_p10 = scmp.lt.s32.totalorder %s1538_s24, %s1531_s26 }
  0x70   : > { %p1535_p8 = pneg %p1534_p3  ;;  %p1541_p2 = por %p1540_p10, %p1539_p9 }
  0x72   : > { %p1542_p4 = pnand %p1541_p2, %p1535_p8 }
  0x74   : > { %1545 = shalt.err (!%p1542_p4)
}
  0x75   : > { %s1659_s2 = smov 128   ;;  %s1660_s18 = smov 8  }
  0x76   : > { %1320 = dma.hbm_to_vmem [thread:$0]  (!%p1812_p12), %s1878_s0, 256, %s1880_s27, %s300_s22, %s1659_s2, %s1659_s2, %s1660_s18  }
  0x77   : > { %s1274_s29 = smul.u32 100, %s1792_s23  ;;  %s1551_s23 = scalar_lea.hbm %s2091_s6, 4800 }
  0x78   : > { %s1275_s12 = smul.u32 1600, %s1650_s30 }
  0x79   : > { %s345_s11 = scalar_lea.vmem [#allocation13], %s1274_s29 }
  0x7a   : > { %s1910_s26 = scalar_lea.hbm %s2091_s6, %s1275_s12  ;;  %s352_s24 = sshll.u32 %s345_s11, 4  ;;  %s353_s24 = int_to_ptr.vmem [resolvable:$true] %s352_s24 }
  0x7b   : > { %s1546_s10 = scalar_lea.hbm %s1910_s26, 1600  ;;  %p1552_p11 = scmp.lt.s32.totalorder %s1910_s26, %s2091_s6 }
  0x7c   : > { %p1547_p1 = scmp.ne.s32.totalorder %s1910_s26, %s1546_s10  ;;  %p1553_p13 = scmp.lt.s32.totalorder %s1551_s23, %s1546_s10 }
  0x7e   : > { %p1549_p7 = pnand %p1547_p1, %p1831_p5  ;;  %p1554_p0 = por %p1553_p13, %p1552_p11 }
  0x80   : > { %p1550_p6 = pneg %p1549_p7 }
  0x82   : > { %p1555_p3 = pnand %p1554_p0, %p1550_p6 }
  0x84   : > { %1558 = shalt.err (!%p1555_p3)
}
  0x85   : > { %s1559_s2 = scalar_lea.vmem %s353_s24, 1600  ;;  %s1661_s18 = smov [#allocation13]  }
  0x86   : > { %p1560_p8 = scmp.ne.s32.totalorder %s353_s24, %s1559_s2  ;;  %s1564_s29 = sshll.u32 %s1661_s18, 4  ;;  %s1565_s29 = int_to_ptr.vmem [resolvable:$false] %s1564_s29 }
  0x87   : > { %s1566_s12 = scalar_lea.vmem %s1565_s29, 3200  ;;  %p1567_p2 = scmp.lt.s32.totalorder %s353_s24, %s1565_s29 }
  0x88   : > { %p1562_p9 = pnand %p1560_p8, %p1831_p5  ;;  %p1568_p4 = scmp.lt.s32.totalorder %s1566_s12, %s1559_s2 }
  0x8a   : > { %p1563_p10 = pneg %p1562_p9  ;;  %p1569_p1 = por %p1568_p4, %p1567_p2 }
  0x8c   : > { %p1570_p7 = pnand %p1569_p1, %p1563_p10 }
  0x8e   : > { %1573 = shalt.err (!%p1570_p7)
}
  0x8f   : > { %s2131_s1 = smov 4   ;;  %p2132_p5 = scmp.ne.s32.totalorder %s2121_s19, 0 }
  0x90   : > { %1326 = dma.hbm_to_vmem [thread:$0]  (!%p1812_p12), %s1910_s26, 1600, %s353_s24, %s1825_s15, %s2126_s21, %s2126_s21, %s2131_s1  }
  0x91   : > { %370 = sbr.rel (%p2132_p5) target bundleno = 1170 (0x492), region = 52  ;;  %p2133_p6 = scmp.eq.s32.totalorder (!%p2132_p5), %s1738_s9, 0 }
  0x96   : > { %1617 = dma.done.wait (%p2133_p6), [#allocation6], 16   ;;  %p2134_p11 = pmov %p2133_p6 }
  0x97   : > { %s1939_s10 = sand.u32 1, %s1642_s28   ;;  %p2135_p12 = scmp.ne.s32.totalorder %s2117_s16, 0 }
  0x98   : > { %1619 = vsyncadd (%p2134_p11), [#allocation6], 4294967280  ;;  %s1195_s20 = sshll.u32 %s1939_s10, 4  ;;  %s377_s13 = scalar_lea.sflag [#allocation4], %s1939_s10 }
  0x99   : > { %s1943_s14 = scalar_lea.vmem [#allocation7], %s1195_s20 }
  0x9a   : > { %1621 = dma.done.wait (%p2135_p12), %s377_s13, 256  }
  0x9b   : > { %1623 = vsyncadd (%p2135_p12), %s377_s13, 4294967040  ;;  %p2136_p13 = pmov %p2133_p6 }
  0x9c   : > { %p2137_p0 = pmov %p2133_p6 }
  0x9d   : > { %1625 = dma.done.wait (%p2136_p13), [#allocation9], 256  }
  0x9e   : > { %1627 = vsyncadd (%p2137_p0), [#allocation9], 4294967040  ;;  %s393_s19 = sand.u32 1, %s1738_s9   ;;  %s1198_s15 = sshll.u32 %s1939_s10, 3 }
  0x9f   : > { %s394_s21 = scalar_lea.sflag [#allocation12], %s393_s19  ;;  %s1955_s25 = scalar_lea.vmem [#allocation11], %s1198_s15 }
  0xa0   : > { %1629 = dma.done.wait (%p2135_p12), %s394_s21, 1728  }
  0xa1   : > { %1631 = vsyncadd (%p2135_p12), %s394_s21, 4294965568  ;;  %s1276_s26 = smul.u32 100, %s1939_s10 }
  0xa3   : > { %s1962_s11 = scalar_lea.vmem [#allocation13], %s1276_s26 }
  0xa4   : > { %411 = sfence }
  0xa5   : > { %p453_p3 = scmp.lt.s32.totalorder %s1738_s9, 2  ;;  %s1972_s22 = scalar_lea.vmem [#allocation14], %s1195_s20 }
  0xa6   : > { %p2138_p8 = scmp.ne.s32.totalorder %s1738_s9, 0 }
  0xa7   : > { %s1966_s24 = scalar_select %p453_p3, %s1738_s9, 2 }
  0xa8   : > { %460 = sbr.rel (%p2138_p8) target bundleno = 324 (0x144), region = 80 }
  0xa9   : > { %s455_s27 = scalar_lea.vmem %s2092_s7, %s1966_s24 }
  0xad   : > { %v1235_v0 = vld [vmem:[#allocation10] sm:$0xff]   ;;  %v1239_v1 = vld [vmem:[#allocation8] sm:$0xff]   ;;  %vm473_vm0 = vcmask 130048   ;;  %vm480_vm1 = vcmask 7168  }
  0xae   : > { %v1236_v2 = vunpack.c.l.bf16 %v1235_v0  ;;  %v1240_v3 = vunpack.c.l.bf16 %v1239_v1  ;;  %v1237_v4 = vunpack.c.h.bf16 %v1235_v0  ;;  %v1241_v5 = vunpack.c.h.bf16 %v1239_v1 }
  0xb0   : > { %v469_v6 = vsub.f32 %v1236_v2, %v1240_v3  ;;  %v470_v7 = vsub.f32 %v1237_v4, %v1241_v5 }
  0xb2   : > { %v471_v8 = vmul.f32 %v469_v6, %v469_v6  ;;  %v472_v9 = vmul.f32 %v470_v7, %v470_v7 }
  0xb4   : > { %v474_v10 = vsel %vm473_vm0, %v471_v8, 0.0  ;;  %v477_v11 = vsel %vm473_vm0, %v472_v9, 0.0 }
  0xb5   : > { %475 = vadd.xlane.f32.xlu0 %v474_v10 }
  0xb9   : > { %478 = vadd.xlane.f32.xlu0 %v477_v11 }
 0x13e   : > { %v476_v12 = vpop.xlane.xlu0 %475 }
 0x13f   : > { %481 = vst.msk [vmem:[#allocation2] sm:$0xff] %vm480_vm1, %v476_v12 }
 0x142   : > { %v479_v13 = vpop.xlane.xlu0 %478 }
 0x143   : > { %482 = vst.msk [vmem:[#allocation2 + $0x8] sm:$0xff] %vm480_vm1, %v479_v13 }
 0x144 PF: > { %v1389_v14 = vld [vmem:[%s1962_s11 + $0x38] sm:$0xff]   ;;  %v1662_v15 = vmov 0   ;;  %v1390_v16 = vld [vmem:[%s1962_s11 + $0x30] sm:$0xff]   ;;  %v1663_v17 = vmov 0.0   ;;  %v1391_v18 = vld [vmem:[%s1962_s11 + $0x28] sm:$0xff]   ;;  %vm600_vm2 = vcmask 588800  }
 0x145   : > { %608 = vmatprep.subr.bf16.mxu0 %v1662_v15  ;;  %1250 = vmatprep.subr.bf16.mxu1 %v1663_v17  ;;  %v1392_v19 = vld [vmem:[%s1962_s11 + $0x20] sm:$0xff]   ;;  %v1393_v21 = vld [vmem:[%s1962_s11 + $0x18] sm:$0xff]   ;;  %vm759_vm3 = vcmask 130048   ;;  %s1664_s16 = smov 100   ;;  %v1394_v26 = vld [vmem:[%s1962_s11 + $0x10] sm:$0xff]   ;;  %vm604_vm4 = vcmask 1043456  }
 0x146   : > { %609 = vmatpush1.bf16.msra.mxu0 %v1389_v14  ;;  %v1404_v20 = vld [vmem:[%s1943_s14 + $0x4] ss:$8 sps:$4 sm:$0xff]   ;;  %v1397_v29 = vld [vmem:[%s1962_s11 + $0x60] ss:$0 sps:$4 sm:$0xff]   ;;  %vm1665_vm5 = vmmov 0   ;;  %s511_s29 = sld [smem:[#allocation3 + %s1738_s9]] }
 0x147   : > { %610 = vmatprep.subr.bf16.mxu0 %v1662_v15  ;;  %v666_v22 = vld [vmem:[#allocation2] sm:$0xff]  ;;  %1216 = vmatprep.mubr.msk.bf16.mxu0 %vm600_vm2, %v1404_v20  ;;  %v1396_v28 = vld [vmem:[%s1962_s11] sm:$0xff]   ;;  %v606_v30 = vsel %vm604_vm4, %v1397_v29, 0  ;;  %v1398_v31 = vld [vmem:[%s1962_s11 + $0x58] sm:$0xff]   ;;  %s1666_s12 = smov 28   ;;  %v1667_v1 = vmov 100  }
 0x148   : > { %v1405_v23 = vld [vmem:[%s1955_s25] sm:$0xff]   ;;  %672 = vrot.lane.b32.xlu0 %v666_v22, %s1664_s16  ;;  %v1395_v27 = vld [vmem:[%s1962_s11 + $0x8] sm:$0xff]   ;;  %v1401_v34 = vld [vmem:[%s1962_s11 + $0x40] sm:$0xff]   ;;  %1252 = vmatprep.mubr.msk.bf16.mxu1 %vm1665_vm5, %v1663_v17  ;;  %vm688_vm6 = vcmask 7168   ;;  %s1229_s23 = sshll.u32 %s1738_s9, 7  ;;  %s1012_s9 = scalar_lea.sflag [#allocation5], %s1939_s10 }
 0x149   : > { %v764_v25 = vsel %vm759_vm3, %v1405_v23, 0  ;;  %v1399_v32 = vld [vmem:[%s1962_s11 + $0x50] sm:$0xff]   ;;  %v1400_v33 = vld [vmem:[%s1962_s11 + $0x48] sm:$0xff]   ;;  %v1406_v36 = vld [vmem:[%s2090_s5] sm:$0xff]   ;;  %1387 = vset.pattern.permute.xlu0 %v1667_v1  ;;  %1388 = vset.pattern.permute.xlu1 %v1667_v1  ;;  %p2139_p10 = scmp.ne.s32.totalorder %s2118_s17, 0 }
 0x14a   : > { %611 = vmatpush1.bf16.msra.mxu0 %v1390_v16  ;;  %v667_v24 = vld [vmem:[#allocation2 + $0x8] sm:$0xff]  ;;  %1251 = vmatpush3.bf16.xpose.msra.mxu1 %v764_v25  ;;  %v1407_v47 = vld [vmem:[#allocation8] sm:$0xff]   ;;  %v1408_v49 = vld [vmem:[#allocation10] sm:$0xff]  }
 0x14b   : > { %612 = vmatprep.subr.bf16.mxu0 %v1662_v15  ;;  %1256 = vmatprep.subr.bf16.mxu1 %v1663_v17  ;;  %v1402_v35 = vld [vmem:[%s1943_s14] ss:$8 sps:$4 sm:$0xff]  }
 0x14c   : > { %674 = vrot.lane.b32.xlu0 %v667_v24, %s1664_s16  ;;  %v649_v37 = vstv %s511_s29  ;;  %s1024_s16 = sshll.u32 %s1972_s22, 4  ;;  %s2039_s29 = scalar_lea.hbm %s2093_s8, %s1229_s23  ;;  %s2041_s16 = int_to_ptr.vmem [resolvable:$true] %s1024_s16 }
 0x14d   : > { %s1574_s24 = scalar_lea.vmem %s2041_s16, 256 }
 0x14e   : > { %613 = vmatpush1.bf16.msra.mxu0 %v1391_v18  ;;  %p1575_p9 = scmp.ne.s32.totalorder %s2041_s16, %s1574_s24 }
 0x14f   : > { %614 = vmatprep.subr.bf16.mxu0 %v1662_v15 }
 0x150   : > { %p1576_p2 = pnand %p1575_p9, %p2139_p10 }
 0x151   : > { %1253 = vmatmul.mubr.msk.bf16.vlgmr.msra.gmra.mxu1 %vm759_vm3, %v1406_v36 }
 0x152   : > { %615 = vmatpush1.bf16.msra.mxu0 %v1392_v19  ;;  %1258 = vmatprep.mubr.msk.bf16.mxu1 %vm1665_vm5, %v1663_v17  ;;  %p1577_p4 = pneg %p1576_p2 }
 0x153   : > { %616 = vmatprep.subr.bf16.mxu0 %v1662_v15 }
 0x156   : > { %617 = vmatpush1.bf16.msra.mxu0 %v1393_v21 }
 0x157   : > { %618 = vmatprep.subr.bf16.mxu0 %v1662_v15 }
 0x15a   : > { %619 = vmatpush1.bf16.msra.mxu0 %v1394_v26 }
 0x15b   : > { %620 = vmatprep.subr.bf16.mxu0 %v1662_v15 }
 0x15e   : > { %621 = vmatpush1.bf16.msra.mxu0 %v1395_v27 }
 0x15f   : > { %622 = vmatprep.subr.bf16.mxu0 %v1662_v15 }
 0x162   : > { %623 = vmatpush1.bf16.msra.mxu0 %v1396_v28 }
 0x163   : > { %630 = vmatprep.subr.bf16.mxu0 %v1662_v15 }
 0x166   : > { %631 = vmatpush2.bf16.msra.mxu0 %v606_v30 }
 0x167   : > { %632 = vmatprep.subr.bf16.mxu0 %v1662_v15 }
 0x16a   : > { %633 = vmatpush2.bf16.msra.mxu0 %v1398_v31 }
 0x16b   : > { %634 = vmatprep.subr.bf16.mxu0 %v1662_v15 }
 0x16e   : > { %635 = vmatpush2.bf16.msra.mxu0 %v1399_v32 }
 0x16f   : > { %636 = vmatprep.subr.bf16.mxu0 %v1662_v15 }
 0x172   : > { %637 = vmatpush2.bf16.msra.mxu0 %v1400_v33 }
 0x173   : > { %638 = vmatprep.subr.bf16.mxu0 %v1662_v15 }
 0x176   : > { %639 = vmatpush2.bf16.msra.mxu0 %v1401_v34 }
 0x179   : > { %641 = vmatmul.mubr.bf16.vlgmr.msra.gmra.mxu0 %v1402_v35 }
 0x1ba   : > { %v673_v56 = vpop.permute.xlu0 %672 }
 0x1be   : > { %v675_v62 = vpop.permute.xlu0 %674 }
 0x211   : > { %v800_v5 = vpop.f32.mrf.mxu1 }
 0x213   : > { %v1254_v6 = vpop.f32.mrf.mxu1 }
 0x239   : > { %v642_v38 = vpop.f32.mrf.mxu0 }
 0x23a   : > { %v650_v39 = vadd.f32 %v649_v37, %v642_v38 }
 0x23b   : > { %v644_v40 = vpop.f32.mrf.mxu0 }
 0x23c   : > { %v1217_v41 = vmul.f32 -1.442695, %v650_v39 }
 0x23d   : > { %v645_v42 = vpop.f32.mrf.mxu0 }
 0x23e   : > { %1409 = vpow2.f32 %v1217_v41  ;;  %v651_v43 = vadd.f32 %v649_v37, %v645_v42  ;;  %v810_v44 = vpack.c.bf16 %v645_v42, %v642_v38  ;;  %v2004_v45 = vadd.f32 %v645_v42, %v642_v38 }
 0x23f   : > { %v647_v46 = vpop.f32.mrf.mxu0 }
 0x240   : > { %v1218_v48 = vmul.f32 -1.442695, %v651_v43  ;;  %1257 = vmatpush3.bf16.msra.mxu1 %v810_v44 }
 0x241   : > { %1262 = vmatprep.subr.bf16.mxu1 %v1663_v17 }
 0x242   : > { %1411 = vpow2.f32 %v1218_v48 }
 0x243   : > { %1259 = vmatmul.mubr.msk.bf16.vlgmr.msra.gmra.mxu1 %vm759_vm3, %v1407_v47 }
 0x244   : > { %1263 = vmatpush3.bf16.msra.mxu1 %v810_v44  ;;  %1264 = vmatprep.mubr.msk.bf16.mxu1 %vm1665_vm5, %v1663_v17 }
 0x245   : > { %1268 = vmatprep.subr.bf16.mxu1 %v1663_v17 }
 0x24b   : > { %v1410_v50 = vpop.eup %1409  ;;  %1265 = vmatmul.mubr.msk.bf16.vlgmr.msra.gmra.mxu1 %vm759_vm3, %v1408_v49 }
 0x24c   : > { %v658_v51 = vadd.f32 1.0, %v1410_v50  ;;  %1269 = vmatpush3.bf16.msra.mxu1 %v810_v44  ;;  %1270 = vmatprep.mubr.msk.bf16.mxu1 %vm1665_vm5, %v1663_v17  ;;  %v803_v17 = vpop.f32.mrf.mxu1 }
 0x24e   : > { %1413 = vrcp.f32 %v658_v51  ;;  %v1255_v18 = vpop.f32.mrf.mxu1 }
 0x24f   : > { %v1412_v52 = vpop.eup %1411 }
 0x250   : > { %v659_v53 = vadd.f32 1.0, %v1412_v52 }
 0x252   : > { %1415 = vrcp.f32 %v659_v53 }
 0x253   : > { %1417 = vtanh.f32 %v800_v5 }
 0x254   : > { %1419 = vtanh.f32 %v803_v17 }
 0x25b   : > { %v1414_v54 = vpop.eup %1413 }
 0x25c   : > { %v664_v55 = vsub.f32 1.0, %v1414_v54  ;;  %v710_v63 = vmul.f32 %v1414_v54, %v1414_v54 }
 0x25e   : > { %v668_v57 = vmul.f32 %v664_v55, %v664_v55  ;;  %v712_v2 = vmul.f32 %v710_v63, %v673_v56  ;;  %v958_v63 = vrot.slane %v2004_v45, 4 }
 0x25f   : > { %v1416_v58 = vpop.eup %1415 }
 0x260   : > { %v665_v59 = vsub.f32 1.0, %v1416_v58  ;;  %v678_v60 = vmul.f32 %v673_v56, %v668_v57  ;;  %v711_v3 = vmul.f32 %v1416_v58, %v1416_v58  ;;  %v1418_v27 = vpop.eup %1417  ;;  %v959_v1 = vadd.f32 %v958_v63, %v2004_v45 }
 0x261   : > { %v1420_v28 = vpop.eup %1419 }
 0x262   : > { %v669_v61 = vmul.f32 %v665_v59, %v665_v59  ;;  %682 = vrot.lane.b32.xlu1 %v678_v60, %s1666_s12  ;;  %v713_v4 = vmul.f32 %v711_v3, %v675_v62  ;;  %v809_v29 = vpack.c.bf16 %v1420_v28, %v1418_v27 }
 0x264   : > { %v679_v0 = vmul.f32 %v675_v62, %v669_v61  ;;  %1271 = vmatmul.mubr.msk.bf16.vlgmr.msra.gmra.mxu1 %vm759_vm3, %v809_v29 }
 0x266   : > { %684 = vrot.lane.b32.xlu1 %v679_v0, %s1666_s12 }
 0x26a   : > { %716 = vrot.lane.b32.xlu1 %v712_v2, %s1666_s12  ;;  %v960_v2 = vrot.slane %v959_v1, 2 }
 0x26e   : > { %718 = vrot.lane.b32.xlu1 %v713_v4, %s1666_s12  ;;  %v961_v4 = vadd.f32 %v960_v2, %v959_v1 }
 0x2d4   : > { %v683_v7 = vpop.permute.xlu1 %682 }
 0x2d5   : > { %v689_v9 = vsel %vm688_vm6, %v683_v7, 0.0  ;;  %v962_v7 = vrot.slane %v961_v4, 1 }
 0x2d8   : > { %v685_v8 = vpop.permute.xlu1 %684 }
 0x2d9   : > { %v690_v10 = vsel %vm688_vm6, %v685_v8, 0.0 }
 0x2da   : > { %v691_v11 = vadd.f32 %v690_v10, %v689_v9 }
 0x2dc   : > { %692 = vadd.xlane.f32.xlu0 %v691_v11  ;;  %v717_v12 = vpop.permute.xlu1 %716  ;;  %v963_v11 = vadd.f32 %v962_v7, %v961_v4 }
 0x2dd   : > { %v722_v14 = vsel %vm688_vm6, %v717_v12, 0.0 }
 0x2e0   : > { %v719_v13 = vpop.permute.xlu1 %718 }
 0x2e1   : > { %v723_v15 = vsel %vm688_vm6, %v719_v13, 0.0 }
 0x2e2   : > { %v724_v16 = vadd.f32 %v723_v15, %v722_v14 }
 0x2e4   : > { %725 = vadd.xlane.f32.xlu1 %v724_v16 }
 0x2f2   : > { %967 = vperm.xlu0 %1387, %v1414_v54  }
 0x2f5   : > { %972 = vperm.xlu1 %1388, %v1416_v58  }
 0x2f9   : > { %979 = vperm.xlu1 %1388, %v664_v55  }
 0x2fd   : > { %984 = vperm.xlu1 %1388, %v665_v59  }
 0x303   : > { %v2014_v19 = vpop.f32.mrf.mxu1 }
 0x305   : > { %v1260_v20 = vpop.f32.mrf.mxu1 }
 0x307   : > { %v2016_v21 = vpop.f32.mrf.mxu1 }
 0x309   : > { %v1261_v22 = vpop.f32.mrf.mxu1 }
 0x30a   : > { %v1227_v22 = vld [vmem:[%s455_s27] ss:$0 sm:$0xff]  ;;  %s1668_s27 = smov [#allocation14]  }
 0x30b   : > { %v2018_v23 = vpop.f32.mrf.mxu1  ;;  %s1578_s12 = sshll.u32 %s1668_s27, 4  ;;  %s1579_s12 = int_to_ptr.vmem [resolvable:$false] %s1578_s12 }
 0x30c   : > { %p1581_p1 = scmp.lt.s32.totalorder %s2041_s16, %s1579_s12 }
 0x30d   : > { %v1266_v24 = vpop.f32.mrf.mxu1 }
 0x30f   : > { %v2020_v25 = vpop.f32.mrf.mxu1 }
 0x311   : > { %v1267_v26 = vpop.f32.mrf.mxu1 }
 0x324   : > { %v950_v51 = vpop.f32.mrf.mxu1 }
 0x326   : > { %v1272_v52 = vpop.f32.mrf.mxu1 }
 0x328   : > { %v953_v54 = vpop.f32.mrf.mxu1 }
 0x32a   : > { %v1273_v55 = vpop.f32.mrf.mxu1 }
 0x365   : > { %v693_v30 = vpop.xlane.xlu0 %692 }
 0x366   : > { %v694_v31 = vrot.slane %v693_v30, 4 }
 0x368   : > { %v695_v32 = vadd.f32 %v694_v31, %v693_v30 }
 0x36a   : > { %v696_v33 = vrot.slane %v695_v32, 2 }
 0x36c   : > { %v697_v34 = vadd.f32 %v696_v33, %v695_v32 }
 0x36d   : > { %v726_v37 = vpop.xlane.xlu1 %725  ;;  %v968_v6 = vpop.permute.xlu0 %967 }
 0x36e   : > { %v698_v35 = vrot.slane %v697_v34, 1  ;;  %v727_v38 = vrot.slane %v726_v37, 4  ;;  %v975_v10 = vmul.f32 %v968_v6, %v2014_v19 }
 0x370   : > { %v699_v36 = vadd.f32 %v698_v35, %v697_v34  ;;  %v728_v40 = vadd.f32 %v727_v38, %v726_v37 }
 0x371   : > { %v973_v0 = vpop.permute.xlu1 %972 }
 0x372   : > { %1277 = vpush %v699_v36  ;;  %v729_v41 = vrot.slane %v728_v40, 2  ;;  %v976_v45 = vmul.f32 %v973_v0, %v2016_v21 }
 0x374   : > { %v730_v42 = vadd.f32 %v729_v41, %v728_v40 }
 0x375   : > { %v980_v3 = vpop.permute.xlu1 %979 }
 0x376   : > { %v731_v44 = vrot.slane %v730_v42, 1  ;;  %v987_v8 = vmul.f32 %v980_v3, %v2018_v23 }
 0x378   : > { %v732_v50 = vadd.f32 %v731_v44, %v730_v42  ;;  %v989_v13 = vadd.f32 %v987_v8, %v975_v10 }
 0x379   : > { %v985_v5 = vpop.permute.xlu1 %984 }
 0x37a   : > { %v988_v9 = vmul.f32 %v985_v5, %v2020_v25 }
 0x37c   : > { %v990_v14 = vadd.f32 %v988_v9, %v976_v45 }
 0x3a3   : > { %s1278_s1 = spop %1277 }
 0x3a4   : > { %v701_v39 = vstv %s1278_s1  ;;  %s1580_s1 = scalar_lea.vmem %s1579_s12, 512 }
 0x3a5   : > { %1421 = vrsqrt.f32 %v701_v39  ;;  %vm704_vm7 = vcmp.eq.f32.partialorder %v701_v39, inf  ;;  %v707_v47 = vand.u32 2147483648, %v701_v39  ;;  %vm706_vm8 = vcmp.eq.f32.partialorder %v701_v39, 0.0  ;;  %p1582_p7 = scmp.lt.s32.totalorder %s1580_s1, %s1574_s24 }
 0x3a7   : > { %p1583_p5 = por %p1582_p7, %p1581_p1 }
 0x3a9   : > { %p1584_p6 = pnand %p1583_p5, %p1577_p4 }
 0x3b2   : > { %v1422_v43 = vpop.eup %1421 }
 0x3b3   : > { %v703_v46 = vmul.f32 %v1422_v43, %v701_v39 }
 0x3b5   : > { %v705_v48 = vsel %vm704_vm7, %v701_v39, %v703_v46 }
 0x3b6   : > { %v708_v49 = vsel %vm706_vm8, %v707_v47, %v705_v48 }
 0x3b7   : > { %1279 = vpush %v708_v49 }
 0x3b8   : > { %1281 = vpush %v732_v50 }
 0x3e8   : > { %s1280_s20 = spop %1279 }
 0x3e9   : > { %s1282_s13 = spop %1281 }
 0x3ea   : > { %v734_v53 = vstv %s1282_s13 }
 0x3eb   : > { %1423 = vrsqrt.f32 %v734_v53  ;;  %vm737_vm9 = vcmp.eq.f32.partialorder %v734_v53, inf  ;;  %v740_v58 = vand.u32 2147483648, %v734_v53  ;;  %vm739_vm10 = vcmp.eq.f32.partialorder %v734_v53, 0.0 }
 0x3f8   : > { %v1424_v56 = vpop.eup %1423 }
 0x3f9   : > { %v736_v57 = vmul.f32 %v1424_v56, %v734_v53 }
 0x3fb   : > { %v738_v59 = vsel %vm737_vm9, %v734_v53, %v736_v57 }
 0x3fc   : > { %v741_v60 = vsel %vm739_vm10, %v740_v58, %v738_v59 }
 0x3fd   : > { %1283 = vpush %v741_v60 }
 0x42e   : > { %s1284_s14 = spop %1283 }
 0x42f   : > { %s743_s19 = sadd.f32 %s1284_s14, %s1280_s20 }
 0x431   : > { %s744_s15 = sadd.f32 1e-08, %s743_s19 }
 0x433   : > { %v745_v61 = vstv %s744_s15 }
 0x434   : > { %1425 = vrcp.f32 %v745_v61 }
 0x441   : > { %v1426_v62 = vpop.eup %1425 }
 0x442   : > { %1285 = vpush %v1426_v62 }
 0x473   : > { %s1286_s21 = spop %1285 }
 0x474   : > { %s748_s25 = smul.f32 %s1286_s21, %s1284_s14 }
 0x476   : > { %s964_s26 = smul.f32 0.5, %s748_s25 }
 0x478   : > { %v991_v12 = vstv %s964_s26 }
 0x479   : > { %v992_v15 = vmul.f32 %v991_v12, %v950_v51  ;;  %v993_v16 = vmul.f32 %v991_v12, %v953_v54  ;;  %v996_v20 = vmul.f32 %v991_v12, %v963_v11 }
 0x47b   : > { %v994_v17 = vadd.f32 %v992_v15, %v989_v13  ;;  %v995_v18 = vadd.f32 %v993_v16, %v990_v14 }
 0x47d   : > { %v997_v19 = vadd.f32 %v996_v20, %v994_v17  ;;  %v998_v21 = vadd.f32 %v996_v20, %v995_v18 }
 0x47f   : > { %v1005_v23 = vadd.f32 %v1227_v22, %v997_v19  ;;  %v1006_v24 = vadd.f32 %v1227_v22, %v998_v21 }
 0x481   : > { %v1007_v25 = vmax.f32 %v1005_v23, 0.0  ;;  %v1008_v26 = vmax.f32 %v1006_v24, 0.0 }
 0x483   : > { %1009 = vst [vmem:[%s1972_s22] sm:$0xff] %v1007_v25  ;;  %1010 = vst [vmem:[%s1972_s22 + $0x8] sm:$0xff] %v1008_v26 }
 0x484   : > { %1587 = shalt.err (!%p1584_p6)
}
 0x485   : > { %s1588_s22 = scalar_lea.hbm %s2039_s29, 256  ;;  %s1592_s14 = scalar_lea.hbm %s2093_s8, 768 }
 0x486   : > { %p1589_p11 = scmp.ne.s32.totalorder %s2039_s29, %s1588_s22  ;;  %p1593_p0 = scmp.lt.s32.totalorder %s2039_s29, %s2093_s8 }
 0x487   : > { %p1594_p3 = scmp.lt.s32.totalorder %s1592_s14, %s1588_s22 }
 0x488   : > { %p1590_p12 = pnand %p1589_p11, %p2139_p10 }
 0x489   : > { %p1595_p8 = por %p1594_p3, %p1593_p0 }
 0x48a   : > { %p1591_p13 = pneg %p1590_p12 }
 0x48c   : > { %p1596_p9 = pnand %p1595_p8, %p1591_p13 }
 0x48e   : > { %1599 = shalt.err (!%p1596_p9)
}
 0x48f   : > { %s1669_s21 = smov 128   ;;  %s1670_s25 = smov 384  }
 0x490   : > { %s1671_s26 = smov 8  }
 0x491   : > { %1305 = dma.vmem_to_hbm [thread:$0]  (%p2139_p10), %s2041_s16, 256, %s2039_s29, %s1012_s9, %s1669_s21, %s1670_s25, %s1671_s26  }
 0x492 PF: > { %s2140_s11 = sld [smem:[#allocation20_spill]]  ;;  %p1338_p2 = scmp.ge.s32.totalorder %s1650_s30, 2 }
 0x493   : > { %s2141_s0 = sld [smem:[#allocation24_spill]] }
 0x498   : > { %s1039_s23 = sand.u32 1, %s2140_s11  }
 0x499   : > { %p2142_p4 = scmp.ne.s32.totalorder %s2141_s0, 0  ;;  %s1040_s2 = scalar_lea.sflag [#allocation5], %s1039_s23 }
 0x49b   : > { %p1328_p1 = pnand %p1338_p2, %p2142_p4 }
 0x49d   : > { %p1329_p7 = pneg %p1328_p1 }
 0x49f   : > { %1633 = dma.done.wait (%p1329_p7), %s1040_s2, 256  }
 0x4a0   : > { %1635 = vsyncadd (%p1329_p7), %s1040_s2, 4294967040  ;;  %s2143_s30 = sld [smem:[#allocation22_spill]]  ;;  %s2146_s27 = smov %s1642_s28 }
 0x4a1   : > { %s2144_s18 = sld [smem:[#allocation21_spill]] }
 0x4a2   : > { %s2145_s29 = sld [smem:[#allocation23_spill]] }
 0x4a6   : > { %p26_p5 = scmp.ge.s32.totalorder %s2143_s30, 5  }
 0x4a7   : > { %s2147_s28 = smov %s2144_s18 }
 0x4a8   :  { %28 = sbr.rel (!%p26_p5) target bundleno = 13 (0xd), region = 141 }
 0x4ad   :  { %1045 = vsyncpa [#allocation4], 1 }
 0x4ae   :  { %1047 = vsyncpa [#allocation4 + $0x1], 1 }
 0x4af   :  { %1048 = vsyncpa [#allocation9], 1 }
 0x4b0   :  { %1049 = vsyncpa [#allocation12], 1 }
 0x4b1   :  { %1051 = vsyncpa [#allocation12 + $0x1], 1 }
 0x4b2   :  { %1052 = vsyncpa [#allocation5], 1 }
 0x4b3   :  { %1054 = vsyncpa [#allocation5 + $0x1], 1 }
 0x4b4   :  { %1055 = vsyncpa [#allocation6], 1 }
 0x4b5   :  { %1057 = vsyncpa [#allocation6 + $0x1], 1 }

</bundles_post_ra>
